<compile_context>
chip_gen: v5e
topology: v5e:2x2
jax: 0.10.0
libtpu: 0.0.40
codegen_flags: <defaults>
</compile_context>

<pallas_src>
import jax
import jax.numpy as jnp
from jax.experimental import pallas as pl
from jax.experimental.pallas import tpu as pltpu


# ------------------------------ fused kernel ------------------------------

def _swiglu_kernel(x_ref, w_ref, b_ref, o_ref, acc1_ref, acc2_ref):
    """Fused gate/up projection + SiLU gating.

    x_ref : (tm, tk)     compute dtype (activation tile, loaded once per step)
    w_ref : (2, tk, tn)  compute dtype   [0]=W1^T tile, [1]=W2^T tile
    b_ref : (2, 1, tn)   f32             [0]=b1,        [1]=b2
    o_ref : (tm, tn)     out dtype
    acc*  : (tm, tn)     f32 scratch accumulators
    """
    k = pl.program_id(2)

    @pl.when(k == 0)
    def _init():
        acc1_ref[...] = jnp.zeros_like(acc1_ref)
        acc2_ref[...] = jnp.zeros_like(acc2_ref)

    x = x_ref[...]                                   # one load, two MXU matmuls
    acc1_ref[...] += jnp.dot(x, w_ref[0], preferred_element_type=jnp.float32)
    acc2_ref[...] += jnp.dot(x, w_ref[1], preferred_element_type=jnp.float32)

    @pl.when(k == pl.num_programs(2) - 1)
    def _finalize():
        # bias add + SiLU + gating in f32, once per output tile (epilogue).
        g = acc1_ref[...] + b_ref[0]
        u = acc2_ref[...] + b_ref[1]
        o_ref[...] = (g * jax.lax.logistic(g) * u).astype(o_ref.dtype)


# ------------------------------ tile helpers -------------------------------

def _vmem_capacity_bytes():
    """Best-effort per-core VMEM capacity probe; defaults to 128 MiB."""
    try:
        info = pltpu.get_tpu_info()
        for attr in ("vmem_capacity_bytes", "vmem_size_bytes", "vmem_bytes"):
            v = getattr(info, attr, None)
            if v:
                return int(v)
    except Exception:
        pass
    return 128 * 1024 * 1024


def _divisor_tile(dim, pref, align):
    """Largest multiple of `align` that divides `dim` and is <= pref; falls
    back to the full dim when `dim` is not `align`-aligned (block == full dim
    is always legal)."""
    if dim % align != 0:
        return dim
    t = min((pref // align) * align, dim)
    while t >= align and dim % t != 0:
        t -= align
    return t if t >= align else dim


def _vmem_bytes(tm, tn, tk, cdt_size, out_size):
    acc = 2 * tm * tn * 4                 # two f32 accumulators (resident)
    xbuf = 2 * tm * tk * cdt_size         # double-buffered x tile
    wbuf = 2 * 2 * tk * tn * cdt_size     # double-buffered stacked W tile
    bbuf = 2 * 2 * tn * 4                 # double-buffered stacked bias tile
    obuf = 2 * tm * tn * out_size         # double-buffered output tile
    return acc + xbuf + wbuf + bbuf + obuf


# --------------------------- parameter preparation -------------------------

def prepare_swiglu_params(w1, b1, w2, b2, *, compute_dtype=jnp.bfloat16):
    """One-time weight prep (call OUTSIDE the hot path): transpose the
    torch-Linear (d_out, d_in) weights to (d_in, d_out), cast to the MXU
    compute dtype, and stack gate/up so the kernel streams a single weight
    DMA per grid step. Biases stay in f32 (used only in the f32 epilogue)."""
    d_out = w1.shape[0]
    w = jnp.stack([jnp.asarray(w1).T, jnp.asarray(w2).T]).astype(compute_dtype)
    b = jnp.stack([jnp.asarray(b1).reshape(1, d_out),
                   jnp.asarray(b2).reshape(1, d_out)]).astype(jnp.float32)
    return w, b                    # (2, d_in, d_out), (2, 1, d_out)


# --------------------------------- wrapper ---------------------------------

def swiglu_apply(x, w_stacked, b_stacked, *, out_dtype=None,
                 tm_pref=None, tn_pref=None, tk_pref=None):
    """x: (..., d_in); w_stacked: (2, d_in, d_out); b_stacked: (2, 1, d_out)."""
    compute_dtype = w_stacked.dtype
    _, d_in, d_out = w_stacked.shape
    assert x.shape[-1] == d_in
    orig_lead = x.shape[:-1]
    out_dtype = x.dtype if out_dtype is None else out_dtype

    x2 = x.reshape(-1, d_in)
    M = x2.shape[0]

    cdt_size = jnp.dtype(compute_dtype).itemsize
    out_size = jnp.dtype(out_dtype).itemsize

    vmem_cap = _vmem_capacity_bytes()
    small_vmem = vmem_cap <= 64 * 1024 * 1024        # v7x-class (64 MiB / TC)
    if tm_pref is None:
        tm_pref = 512 if small_vmem else 1024
    if tn_pref is None:
        tn_pref = 1024
    if tk_pref is None:
        tk_pref = 512

    # Pad rows to a packed-sublane multiple (16 for 16-bit compute dtypes) so
    # large row tiles stay legal and bf16 tiles are fully packed. Pad + cast
    # fuse into one XLA pass under jit.
    m_align = 16 if cdt_size < 4 else 8
    pad = (-M) % m_align
    xc = jnp.pad(x2, ((0, pad), (0, 0))) if pad else x2
    xc = xc.astype(compute_dtype)
    Mp = M + pad

    tm = _divisor_tile(Mp, tm_pref, m_align)
    tn = _divisor_tile(d_out, tn_pref, 128)
    tk = _divisor_tile(d_in, tk_pref, 128)

    # Shrink tiles until resident VMEM leaves headroom for Mosaic's internal
    # scratch (critical on 64 MiB-per-TC chips). Halving a divisor of a dim
    # still divides the dim, so legality is preserved.
    budget = int(vmem_cap * 0.70)

    def est():
        return _vmem_bytes(tm, tn, tk, cdt_size, out_size)

    while est() > budget:
        if tn >= tm and tn >= tk and tn % 256 == 0:
            tn //= 2
        elif tm >= tk and tm % (2 * m_align) == 0:
            tm //= 2
        elif tk % 256 == 0:
            tk //= 2
        else:
            break
    if est() > budget:
        raise ValueError(
            f"swiglu tiles ({tm},{tn},{tk}) need {est() / 2**20:.1f} MiB VMEM "
            f"(> {budget / 2**20:.1f} MiB budget); pad d_in/d_out to multiples "
            "of 128 so smaller tiles become legal.")

    # On 2-TensorCore chips make sure the parallel grid axes give >= 2 steps
    # so both cores get work; prefer splitting the output-N axis.
    if small_vmem and (Mp // tm) * (d_out // tn) < 2:
        if tn % 256 == 0:
            tn //= 2
        elif tm % (2 * m_align) == 0:
            tm //= 2

    grid = (Mp // tm, d_out // tn, d_in // tk)
    vmem_limit = min(int(vmem_cap * 0.90),
                     max(int(est() * 1.3), 32 * 1024 * 1024))

    out = pl.pallas_call(
        _swiglu_kernel,
        out_shape=jax.ShapeDtypeStruct((Mp, d_out), out_dtype),
        grid_spec=pltpu.PrefetchScalarGridSpec(
            num_scalar_prefetch=0,
            grid=grid,
            in_specs=[
                pl.BlockSpec((tm, tk), lambda i, j, k: (i, k)),         # x
                pl.BlockSpec((2, tk, tn), lambda i, j, k: (0, k, j)),   # W1/W2
                pl.BlockSpec((2, 1, tn), lambda i, j, k: (0, 0, j)),    # b1/b2
            ],
            out_specs=pl.BlockSpec((tm, tn), lambda i, j, k: (i, j)),
            scratch_shapes=[pltpu.VMEM((tm, tn), jnp.float32),
                            pltpu.VMEM((tm, tn), jnp.float32)],
        ),
        compiler_params=pltpu.CompilerParams(
            dimension_semantics=("parallel", "parallel", "arbitrary"),
            vmem_limit_bytes=vmem_limit),
    )(xc, w_stacked, b_stacked)

    if pad:
        # Padded rows compute silu(b1)*b2 garbage; they are discarded here.
        out = out[:M]
    return out.reshape(*orig_lead, d_out)


def swiglu(x, w1, b1, w2, b2, *, compute_dtype=jnp.bfloat16, out_dtype=None,
           tm_pref=None, tn_pref=None, tk_pref=None):
    """Convenience wrapper matching the torch-Linear layout. NOTE: this pays
    the weight transpose/cast every call — for repeated application prepare
    the params once with prepare_swiglu_params() and use swiglu_apply()."""
    w_stacked, b_stacked = prepare_swiglu_params(
        w1, b1, w2, b2, compute_dtype=compute_dtype)
    return swiglu_apply(x, w_stacked, b_stacked, out_dtype=out_dtype,
                        tm_pref=tm_pref, tn_pref=tn_pref, tk_pref=tk_pref)


# ----------------------------------- main -----------------------------------

if __name__ == "__main__":
    # Small shapes consistent with the module: batch=2, seq=16, d_in=128,
    # d_out=256 (lane-aligned so output stores are lane-dense).
    B, S, D_IN, D_OUT = 2, 16, 128, 256

    key = jax.random.PRNGKey(0)
    kx, kw1, kb1, kw2, kb2 = jax.random.split(key, 5)
    x = jax.random.normal(kx, (B, S, D_IN), dtype=jnp.float32)
    w1 = 0.02 * jax.random.normal(kw1, (D_OUT, D_IN), dtype=jnp.float32)
    b1 = 0.02 * jax.random.normal(kb1, (D_OUT,), dtype=jnp.float32)
    w2 = 0.02 * jax.random.normal(kw2, (D_OUT, D_IN), dtype=jnp.float32)
    b2 = 0.02 * jax.random.normal(kb2, (D_OUT,), dtype=jnp.float32)

    # One-time parameter prep (transpose + cast + stack), outside the hot path.
    w_stacked, b_stacked = prepare_swiglu_params(w1, b1, w2, b2)
    w_stacked = jax.block_until_ready(w_stacked)
    b_stacked = jax.block_until_ready(b_stacked)

    fwd = jax.jit(swiglu_apply)
    out = jax.block_until_ready(fwd(x, w_stacked, b_stacked))

    # pure-JAX reference (f32); loose tolerance for bf16 MXU inputs.
    g_ref = x @ w1.T + b1
    u_ref = x @ w2.T + b2
    ref = jax.nn.silu(g_ref) * u_ref

    assert out.shape == (B, S, D_OUT)
    assert bool(jnp.all(jnp.isfinite(out)))
    assert bool(jnp.allclose(out, ref, atol=1e-2, rtol=5e-2))
    print("KERNEL_OK")
</pallas_src>

<mosaic_0001>
module attributes {stable_mosaic.version = 11 : i64} {
  func.func @_swiglu_kernel(%arg0: i32, %arg1: i32, %arg2: i32, %arg3: memref<32x128xbf16, #tpu.memory_space<vmem>>, %arg4: memref<2x128x256xbf16, #tpu.memory_space<vmem>>, %arg5: memref<2x1x256xf32, #tpu.memory_space<vmem>>, %arg6: memref<32x256xf32, #tpu.memory_space<vmem>>, %arg7: memref<32x256xf32, #tpu.memory_space<vmem>>, %arg8: memref<32x256xf32, #tpu.memory_space<vmem>>) attributes {dimension_semantics = [#tpu.dimension_semantics<parallel>, #tpu.dimension_semantics<parallel>, #tpu.dimension_semantics<arbitrary>], iteration_bounds = array<i64: 1, 1, 1>, scalar_prefetch = 0 : i64, scratch_operands = 2 : i64, tpu.core_type = #tpu.core_type<tc>, window_params = [{transform_indices = @transform_0, window_bounds = array<i64: 32, 128>}, {transform_indices = @transform_1, window_bounds = array<i64: 2, 128, 256>}, {transform_indices = @transform_2, window_bounds = array<i64: 2, 1, 256>}, {transform_indices = @transform_3, window_bounds = array<i64: 32, 256>}]} {
    %c0_i32 = arith.constant 0 : i32
    %0 = arith.cmpi eq, %arg2, %c0_i32 : i32
    %1 = arith.extui %0 : i1 to i32
    %c0_i32_0 = arith.constant 0 : i32
    %2 = arith.cmpi ne, %1, %c0_i32_0 : i32
    scf.if %2 {
      %cst_18 = arith.constant 0.000000e+00 : f32
      %19 = vector.broadcast %cst_18 : f32 to vector<32x256xf32>
      %c0_19 = arith.constant 0 : index
      %c0_20 = arith.constant 0 : index
      %20 = vector.load %arg7[%c0_19, %c0_20] : memref<32x256xf32, #tpu.memory_space<vmem>>, vector<32x256xf32>
      tpu.vector_store %arg7[%c0_19, %c0_20], %19 {strides = array<i32>} : memref<32x256xf32, #tpu.memory_space<vmem>>, vector<32x256xf32>,
      %cst_21 = arith.constant 0.000000e+00 : f32
      %21 = vector.broadcast %cst_21 : f32 to vector<32x256xf32>
      %c0_22 = arith.constant 0 : index
      %c0_23 = arith.constant 0 : index
      %22 = vector.load %arg8[%c0_22, %c0_23] : memref<32x256xf32, #tpu.memory_space<vmem>>, vector<32x256xf32>
      tpu.vector_store %arg8[%c0_22, %c0_23], %21 {strides = array<i32>} : memref<32x256xf32, #tpu.memory_space<vmem>>, vector<32x256xf32>,
    } else {
    }
    %c0 = arith.constant 0 : index
    %c0_1 = arith.constant 0 : index
    %3 = vector.load %arg3[%c0, %c0_1] : memref<32x128xbf16, #tpu.memory_space<vmem>>, vector<32x128xbf16>
    %c0_2 = arith.constant 0 : index
    %c0_3 = arith.constant 0 : index
    %4 = vector.load %arg7[%c0_2, %c0_3] : memref<32x256xf32, #tpu.memory_space<vmem>>, vector<32x256xf32>
    %c0_4 = arith.constant 0 : index
    %c0_5 = arith.constant 0 : index
    %c0_6 = arith.constant 0 : index
    %5 = vector.load %arg4[%c0_4, %c0_5, %c0_6] : memref<2x128x256xbf16, #tpu.memory_space<vmem>>, vector<1x128x256xbf16>
    %6 = vector.shape_cast %5 : vector<1x128x256xbf16> to vector<128x256xbf16>
    %cst = arith.constant dense<0.000000e+00> : vector<32x256xf32>
    %7 = tpu.matmul %3, %6, %cst {dimension_numbers = #tpu.dot_dimension_numbers<[1], [0], [0], [1], [0, 0, 1, 1], [], []>} : vector<32x128xbf16>, vector<128x256xbf16>, vector<32x256xf32> -> vector<32x256xf32>
    %8 = arith.addf %4, %7 : vector<32x256xf32>
    %c0_7 = arith.constant 0 : index
    %c0_8 = arith.constant 0 : index
    %9 = vector.load %arg7[%c0_7, %c0_8] : memref<32x256xf32, #tpu.memory_space<vmem>>, vector<32x256xf32>
    tpu.vector_store %arg7[%c0_7, %c0_8], %8 {strides = array<i32>} : memref<32x256xf32, #tpu.memory_space<vmem>>, vector<32x256xf32>,
    %c0_9 = arith.constant 0 : index
    %c0_10 = arith.constant 0 : index
    %10 = vector.load %arg8[%c0_9, %c0_10] : memref<32x256xf32, #tpu.memory_space<vmem>>, vector<32x256xf32>
    %c1 = arith.constant 1 : index
    %c0_11 = arith.constant 0 : index
    %c0_12 = arith.constant 0 : index
    %11 = vector.load %arg4[%c1, %c0_11, %c0_12] : memref<2x128x256xbf16, #tpu.memory_space<vmem>>, vector<1x128x256xbf16>
    %12 = vector.shape_cast %11 : vector<1x128x256xbf16> to vector<128x256xbf16>
    %cst_13 = arith.constant dense<0.000000e+00> : vector<32x256xf32>
    %13 = tpu.matmul %3, %12, %cst_13 {dimension_numbers = #tpu.dot_dimension_numbers<[1], [0], [0], [1], [0, 0, 1, 1], [], []>} : vector<32x128xbf16>, vector<128x256xbf16>, vector<32x256xf32> -> vector<32x256xf32>
    %14 = arith.addf %10, %13 : vector<32x256xf32>
    %c0_14 = arith.constant 0 : index
    %c0_15 = arith.constant 0 : index
    %15 = vector.load %arg8[%c0_14, %c0_15] : memref<32x256xf32, #tpu.memory_space<vmem>>, vector<32x256xf32>
    tpu.vector_store %arg8[%c0_14, %c0_15], %14 {strides = array<i32>} : memref<32x256xf32, #tpu.memory_space<vmem>>, vector<32x256xf32>,
    %c0_i32_16 = arith.constant 0 : i32
    %16 = arith.cmpi eq, %arg2, %c0_i32_16 : i32
    %17 = arith.extui %16 : i1 to i32
    %c0_i32_17 = arith.constant 0 : i32
    %18 = arith.cmpi ne, %17, %c0_i32_17 : i32
    scf.if %18 {
      %c0_18 = arith.constant 0 : index
      %c0_19 = arith.constant 0 : index
      %19 = vector.load %arg7[%c0_18, %c0_19] : memref<32x256xf32, #tpu.memory_space<vmem>>, vector<32x256xf32>
      %c0_20 = arith.constant 0 : index
      %c0_21 = arith.constant 0 : index
      %c0_22 = arith.constant 0 : index
      %20 = vector.load %arg5[%c0_20, %c0_21, %c0_22] : memref<2x1x256xf32, #tpu.memory_space<vmem>>, vector<1x1x256xf32>
      %21 = vector.shape_cast %20 : vector<1x1x256xf32> to vector<1x256xf32>
      %22 = vector.broadcast %21 : vector<1x256xf32> to vector<32x256xf32>
      %23 = arith.addf %19, %22 : vector<32x256xf32>
      %c0_23 = arith.constant 0 : index
      %c0_24 = arith.constant 0 : index
      %24 = vector.load %arg8[%c0_23, %c0_24] : memref<32x256xf32, #tpu.memory_space<vmem>>, vector<32x256xf32>
      %c1_25 = arith.constant 1 : index
      %c0_26 = arith.constant 0 : index
      %c0_27 = arith.constant 0 : index
      %25 = vector.load %arg5[%c1_25, %c0_26, %c0_27] : memref<2x1x256xf32, #tpu.memory_space<vmem>>, vector<1x1x256xf32>
      %26 = vector.shape_cast %25 : vector<1x1x256xf32> to vector<1x256xf32>
      %27 = vector.broadcast %26 : vector<1x256xf32> to vector<32x256xf32>
      %28 = arith.addf %24, %27 : vector<32x256xf32>
      %29 = arith.negf %23 : vector<32x256xf32>
      %30 = math.exp %29 : vector<32x256xf32>
      %cst_28 = arith.constant 1.000000e+00 : f32
      %31 = vector.broadcast %cst_28 : f32 to vector<32x256xf32>
      %32 = arith.addf %31, %30 : vector<32x256xf32>
      %33 = arith.divf %31, %32 : vector<32x256xf32>
      %34 = arith.mulf %23, %33 : vector<32x256xf32>
      %35 = arith.mulf %34, %28 : vector<32x256xf32>
      %c0_29 = arith.constant 0 : index
      %c0_30 = arith.constant 0 : index
      %36 = vector.load %arg6[%c0_29, %c0_30] : memref<32x256xf32, #tpu.memory_space<vmem>>, vector<32x256xf32>
      tpu.vector_store %arg6[%c0_29, %c0_30], %35 {strides = array<i32>} : memref<32x256xf32, #tpu.memory_space<vmem>>, vector<32x256xf32>,
    } else {
    }
    return
  }
  func.func @transform_0(%arg0: i32, %arg1: i32, %arg2: i32) -> (i32, i32) {
    %c0_i32 = arith.constant 0 : i32
    return %arg0, %arg2 : i32, i32
  }
  func.func @transform_1(%arg0: i32, %arg1: i32, %arg2: i32) -> (i32, i32, i32) {
    %c0_i32 = arith.constant 0 : i32
    %c0_i32_0 = arith.constant 0 : i32
    return %c0_i32, %arg2, %arg1 : i32, i32, i32
  }
  func.func @transform_2(%arg0: i32, %arg1: i32, %arg2: i32) -> (i32, i32, i32) {
    %c0_i32 = arith.constant 0 : i32
    %c0_i32_0 = arith.constant 0 : i32
    %c0_i32_1 = arith.constant 0 : i32
    return %c0_i32, %c0_i32_0, %arg1 : i32, i32, i32
  }
  func.func @transform_3(%arg0: i32, %arg1: i32, %arg2: i32) -> (i32, i32) {
    %c0_i32 = arith.constant 0 : i32
    return %arg0, %arg1 : i32, i32
  }
}

</mosaic_0001>

<bundles_post_ra>
// kernel: swiglu_apply.1
= control target key start
LH: loop header
LB: loop body
LE: loop exit
PB: predicated region body
PF: predicated region fallthrough
CT: control target
= control target key end

     0   :  { %8 = vsyncpa [#allocation5], 0  ;;  %s1038_s0 = inlined_call_operand.vmem [shape: bf16[32,128], index: 0, kind: input, shape index: {}]   ;;  %s1039_s1 = inlined_call_operand.hbm [shape: bf16[2,128,256], index: 1, kind: input, shape index: {}]   ;;  %s1040_s2 = inlined_call_operand.vmem [shape: f32[2,1,256], index: 2, kind: input, shape index: {}]   ;;  %s1041_s3 = inlined_call_operand.hbm [shape: f32[32,256], index: 3, kind: output, shape index: {}]  }
   0x1   :  { %9 = vsyncpa [#allocation6], 0  ;;  %s16_s14 = sshll.u32 %s1039_s1, 4  ;;  %s896_s15 = smov [#allocation4]   ;;  %s17_s14 = int_to_ptr.hbm [resolvable:$true] %s16_s14 }
   0x2   :  { %s18_s16 = sshll.u32 %s896_s15, 4  ;;  %s897_s17 = smov 128   ;;  %s19_s16 = int_to_ptr.vmem [resolvable:$true] %s18_s16 }
   0x3   :  { %s898_s18 = smov 8  }
   0x4   :  { %24 = dma.hbm_to_vmem [thread:$0]  %s17_s14, 4096, %s19_s16, [#allocation5], %s897_s17, %s897_s17, %s898_s18  }
   0x5   :  { %892 = dma.done.wait [#allocation5], 4096  }
   0x6   :  { %893 = vsyncadd [#allocation5], 4294963200  ;;  %v693_v0 = vld [vmem:[#allocation4 + $0x70] sm:$0xf]  ;;  %v789_v1 = vld [vmem:[#allocation4 + $0x74] sm:$0xf0] }
   0x7   :  { %v788_v2 = vld [vmem:[#allocation4 + $0x74] sm:$0xf]  ;;  %v694_v3 = vor.u32 %v789_v1, %v693_v0  ;;  %v695_v4 = vld [vmem:[#allocation4 + $0x78] sm:$0xf0]  ;;  %v685_v5 = vld [vmem:[#allocation4 + $0x60] sm:$0xf] }
   0x8   :  { %v787_v6 = vld [vmem:[#allocation4 + $0x64] sm:$0xf0]  ;;  %v698_v7 = vor.u32 %v788_v2, %v695_v4  ;;  %v786_v8 = vld [vmem:[#allocation4 + $0x64] sm:$0xf]  ;;  %v687_v9 = vld [vmem:[#allocation4 + $0x68] sm:$0xf0] }
   0x9   :  { %171 = vmatpush.bf16.msra.mxu0 %v694_v3  ;;  %v686_v10 = vor.u32 %v787_v6, %v685_v5  ;;  %v690_v11 = vor.u32 %v786_v8, %v687_v9  ;;  %v677_v12 = vld [vmem:[#allocation4 + $0x50] sm:$0xf]  ;;  %v785_v13 = vld [vmem:[#allocation4 + $0x54] sm:$0xf0]  ;;  %v784_v14 = vld [vmem:[#allocation4 + $0x54] sm:$0xf] }
   0xa   :  { %190 = vmatpush.bf16.msra.mxu1 %v698_v7  ;;  %v679_v15 = vld [vmem:[#allocation4 + $0x58] sm:$0xf0]  ;;  %v757_v16 = vld [vmem:[#allocation4 + $0xf0] sm:$0xf]  ;;  %v678_v17 = vor.u32 %v785_v13, %v677_v12  ;;  %v805_v18 = vld [vmem:[#allocation4 + $0xf4] sm:$0xf0] }
   0xb   :  { %v804_v19 = vld [vmem:[#allocation4 + $0xf4] sm:$0xf]  ;;  %v759_v20 = vld [vmem:[#allocation4 + $0xf8] sm:$0xf0]  ;;  %v682_v21 = vor.u32 %v784_v14, %v679_v15  ;;  %v669_v22 = vld [vmem:[#allocation4 + $0x40] sm:$0xf]  ;;  %v758_v25 = vor.u32 %v805_v18, %v757_v16 }
   0xc   :  { %v783_v23 = vld [vmem:[#allocation4 + $0x44] sm:$0xf0]  ;;  %v782_v24 = vld [vmem:[#allocation4 + $0x44] sm:$0xf]  ;;  %v762_v26 = vor.u32 %v804_v19, %v759_v20  ;;  %v671_v27 = vld [vmem:[#allocation4 + $0x48] sm:$0xf0] }
   0xd   :  { %172 = vmatpush.bf16.msra.mxu0 %v686_v10  ;;  %v749_v28 = vld [vmem:[#allocation4 + $0xe0] sm:$0xf]  ;;  %v803_v29 = vld [vmem:[#allocation4 + $0xe4] sm:$0xf0]  ;;  %330 = vmatpush.bf16.msra.mxu2 %v758_v25  ;;  %v802_v31 = vld [vmem:[#allocation4 + $0xe4] sm:$0xf]  ;;  %v670_v33 = vor.u32 %v783_v23, %v669_v22  ;;  %v674_v37 = vor.u32 %v782_v24, %v671_v27 }
   0xe   :  { %191 = vmatpush.bf16.msra.mxu1 %v690_v11  ;;  %349 = vmatpush.bf16.msra.mxu3 %v762_v26  ;;  %v750_v30 = vor.u32 %v803_v29, %v749_v28  ;;  %v751_v32 = vld [vmem:[#allocation4 + $0xe8] sm:$0xf0]  ;;  %v661_v34 = vld [vmem:[#allocation4 + $0x30] sm:$0xf]  ;;  %v781_v35 = vld [vmem:[#allocation4 + $0x34] sm:$0xf0] }
   0xf   :  { %v754_v36 = vor.u32 %v802_v31, %v751_v32  ;;  %v741_v38 = vld [vmem:[#allocation4 + $0xd0] sm:$0xf]  ;;  %v801_v39 = vld [vmem:[#allocation4 + $0xd4] sm:$0xf0]  ;;  %v800_v40 = vld [vmem:[#allocation4 + $0xd4] sm:$0xf]  ;;  %v662_v47 = vor.u32 %v781_v35, %v661_v34 }
  0x10   :  { %v780_v41 = vld [vmem:[#allocation4 + $0x34] sm:$0xf]  ;;  %v663_v42 = vld [vmem:[#allocation4 + $0x38] sm:$0xf0]  ;;  %v742_v44 = vor.u32 %v801_v39, %v741_v38  ;;  %v733_v46 = vld [vmem:[#allocation4 + $0xc0] sm:$0xf] }
  0x11   :  { %173 = vmatpush.bf16.msra.mxu0 %v678_v17  ;;  %v743_v43 = vld [vmem:[#allocation4 + $0xd8] sm:$0xf0]  ;;  %331 = vmatpush.bf16.msra.mxu2 %v750_v30  ;;  %v799_v48 = vld [vmem:[#allocation4 + $0xc4] sm:$0xf0]  ;;  %v798_v49 = vld [vmem:[#allocation4 + $0xc4] sm:$0xf]  ;;  %v666_v51 = vor.u32 %v780_v41, %v663_v42 }
  0x12   :  { %192 = vmatpush.bf16.msra.mxu1 %v682_v21  ;;  %350 = vmatpush.bf16.msra.mxu3 %v754_v36  ;;  %v746_v45 = vor.u32 %v800_v40, %v743_v43  ;;  %v735_v50 = vld [vmem:[#allocation4 + $0xc8] sm:$0xf0]  ;;  %v653_v52 = vld [vmem:[#allocation4 + $0x20] sm:$0xf]  ;;  %v779_v53 = vld [vmem:[#allocation4 + $0x24] sm:$0xf0]  ;;  %v734_v56 = vor.u32 %v799_v48, %v733_v46 }
  0x13   :  { %v778_v54 = vld [vmem:[#allocation4 + $0x24] sm:$0xf]  ;;  %v655_v55 = vld [vmem:[#allocation4 + $0x28] sm:$0xf0]  ;;  %v738_v57 = vor.u32 %v798_v49, %v735_v50  ;;  %v725_v58 = vld [vmem:[#allocation4 + $0xb0] sm:$0xf]  ;;  %v654_v59 = vor.u32 %v779_v53, %v653_v52 }
  0x14   :  { %v797_v60 = vld [vmem:[#allocation4 + $0xb4] sm:$0xf0]  ;;  %v796_v61 = vld [vmem:[#allocation4 + $0xb4] sm:$0xf]  ;;  %v727_v62 = vld [vmem:[#allocation4 + $0xb8] sm:$0xf0]  ;;  %v658_v63 = vor.u32 %v778_v54, %v655_v55 }
  0x15   :  { %174 = vmatpush.bf16.msra.mxu0 %v670_v33  ;;  %332 = vmatpush.bf16.msra.mxu2 %v742_v44  ;;  %v645_v0 = vld [vmem:[#allocation4 + $0x10] sm:$0xf]  ;;  %v777_v1 = vld [vmem:[#allocation4 + $0x14] sm:$0xf0]  ;;  %v776_v2 = vld [vmem:[#allocation4 + $0x14] sm:$0xf]  ;;  %v726_v4 = vor.u32 %v797_v60, %v725_v58  ;;  %v730_v5 = vor.u32 %v796_v61, %v727_v62 }
  0x16   :  { %193 = vmatpush.bf16.msra.mxu1 %v674_v37  ;;  %351 = vmatpush.bf16.msra.mxu3 %v746_v45  ;;  %v647_v3 = vld [vmem:[#allocation4 + $0x18] sm:$0xf0]  ;;  %v717_v6 = vld [vmem:[#allocation4 + $0xa0] sm:$0xf]  ;;  %v646_v7 = vor.u32 %v777_v1, %v645_v0  ;;  %v795_v8 = vld [vmem:[#allocation4 + $0xa4] sm:$0xf0] }
  0x17   :  { %v794_v9 = vld [vmem:[#allocation4 + $0xa4] sm:$0xf]  ;;  %v719_v10 = vld [vmem:[#allocation4 + $0xa8] sm:$0xf0]  ;;  %v650_v11 = vor.u32 %v776_v2, %v647_v3  ;;  %v637_v12 = vld [vmem:[#allocation4] sm:$0xf]  ;;  %v718_v16 = vor.u32 %v795_v8, %v717_v6 }
  0x18   :  { %v775_v13 = vld [vmem:[#allocation4 + $0x4] sm:$0xf0]  ;;  %v774_v14 = vld [vmem:[#allocation4 + $0x4] sm:$0xf]  ;;  %v639_v15 = vld [vmem:[#allocation4 + $0x8] sm:$0xf0]  ;;  %v722_v17 = vor.u32 %v794_v9, %v719_v10 }
  0x19   :  { %175 = vmatpush.bf16.msra.mxu0 %v662_v47  ;;  %333 = vmatpush.bf16.msra.mxu2 %v734_v56  ;;  %v638_v18 = vor.u32 %v775_v13, %v637_v12  ;;  %v709_v19 = vld [vmem:[#allocation4 + $0x90] sm:$0xf]  ;;  %v793_v20 = vld [vmem:[#allocation4 + $0x94] sm:$0xf0]  ;;  %v642_v21 = vor.u32 %v774_v14, %v639_v15  ;;  %v792_v22 = vld [vmem:[#allocation4 + $0x94] sm:$0xf] }
  0x1a   :  { %194 = vmatpush.bf16.msra.mxu1 %v666_v51  ;;  %352 = vmatpush.bf16.msra.mxu3 %v738_v57  ;;  %v711_v23 = vld [vmem:[#allocation4 + $0x98] sm:$0xf0]  ;;  %v772_v24 = vld [vmem:[%s1038_s0] sm:$0xff]  ;;  %v710_v25 = vor.u32 %v793_v20, %v709_v19  ;;  %v791_v28 = vld [vmem:[#allocation4 + $0x84] sm:$0xf0]  ;;  %s614_s28 = sshll.u32 %s1041_s3, 4  ;;  %s615_s28 = int_to_ptr.hbm [resolvable:$true] %s614_s28 }
  0x1b   :  { %v714_v26 = vor.u32 %v792_v22, %v711_v23  ;;  %v701_v27 = vld [vmem:[#allocation4 + $0x80] sm:$0xf]  ;;  %v790_v29 = vld [vmem:[#allocation4 + $0x84] sm:$0xf]  ;;  %v703_v30 = vld [vmem:[#allocation4 + $0x88] sm:$0xf0] }
  0x1c   :  { %v702_v31 = vor.u32 %v791_v28, %v701_v27  ;;  %v706_v32 = vor.u32 %v790_v29, %v703_v30  ;;  %v773_v33 = vld [vmem:[%s1038_s0 + $0x8] sm:$0xff]  ;;  %v395_v34 = vld [vmem:[%s1040_s2] sm:$0x3]  ;;  %s900_s29 = smov 256   ;;  %s901_s30 = smov 16  }
  0x1d   :  { %176 = vmatpush.bf16.msra.mxu0 %v654_v59  ;;  %334 = vmatpush.bf16.msra.mxu2 %v726_v4  ;;  %v934_v35 = vperm.slane %v395_v34, 0  ;;  %v936_v36 = vperm.slane %v395_v34, 1  ;;  %v763_v59 = vld [vmem:[%s1040_s2 + $0x2] sm:$0x3]  ;;  %s899_s2 = smov [#allocation7]  }
  0x1e   :  { %195 = vmatpush.bf16.msra.mxu1 %v658_v63  ;;  %353 = vmatpush.bf16.msra.mxu3 %v730_v5  ;;  %v968_v3 = vperm.slane %v763_v59, 0  ;;  %s612_s25 = sshll.u32 %s899_s2, 4  ;;  %s613_s25 = int_to_ptr.vmem [resolvable:$true] %s612_s25 }
  0x21   :  { %177 = vmatpush.bf16.msra.mxu0 %v646_v7  ;;  %335 = vmatpush.bf16.msra.mxu2 %v718_v16 }
  0x22   :  { %196 = vmatpush.bf16.msra.mxu1 %v650_v11  ;;  %354 = vmatpush.bf16.msra.mxu3 %v722_v17  ;;  %v972_v11 = vperm.slane %v763_v59, 1 }
  0x25   :  { %178 = vmatpush.bf16.msra.mxu0 %v638_v18  ;;  %336 = vmatpush.bf16.msra.mxu2 %v710_v25 }
  0x26   :  { %197 = vmatpush.bf16.msra.mxu1 %v642_v21  ;;  %355 = vmatpush.bf16.msra.mxu3 %v714_v26 }
  0x28   :  { %179 = vmatmul.bf16.vlgmr.msra.gmra.mxu0 %v772_v24 }
  0x29   :  { %198 = vmatmul.bf16.vlgmr.msra.gmra.mxu1 %v772_v24  ;;  %337 = vmatpush.bf16.msra.mxu2 %v702_v31 }
  0x2a   :  { %356 = vmatpush.bf16.msra.mxu3 %v706_v32 }
  0x2c   :  { %338 = vmatmul.bf16.vlgmr.msra.gmra.mxu2 %v772_v24 }
  0x2d   :  { %357 = vmatmul.bf16.vlgmr.msra.gmra.mxu3 %v772_v24 }
  0x38   :  { %184 = vmatmul.bf16.gmra.mxu0 %v773_v33 }
  0x39   :  { %203 = vmatmul.bf16.gmra.mxu1 %v773_v33 }
  0x3c   :  { %343 = vmatmul.bf16.gmra.mxu2 %v773_v33 }
  0x3d   :  { %362 = vmatmul.bf16.gmra.mxu3 %v773_v33 }
  0xa5   :  { %v180_v37 = vpop.f32.mrf.mxu0 }
  0xa6   :  { %v939_v38 = vadd.f32 %v934_v35, %v180_v37  ;;  %v199_v39 = vpop.f32.mrf.mxu1 }
  0xa7   :  { %v942_v40 = vadd.f32 %v936_v36, %v199_v39 }
  0xa8   :  { %v764_v41 = vmul.f32 -1.442695, %v939_v38 }
  0xa9   :  { %v765_v42 = vmul.f32 -1.442695, %v942_v40 }
  0xaa   :  { %812 = vpow2.f32 %v764_v41 }
  0xab   :  { %814 = vpow2.f32 %v765_v42 }
  0xad   :  { %v182_v43 = vpop.f32.mrf.mxu0 }
  0xae   :  { %v947_v44 = vadd.f32 %v934_v35, %v182_v43  ;;  %v201_v45 = vpop.f32.mrf.mxu1 }
  0xaf   :  { %v950_v46 = vadd.f32 %v936_v36, %v201_v45  ;;  %v339_v10 = vpop.f32.mrf.mxu2 }
  0xb0   :  { %v813_v47 = vpop.eup %812  ;;  %v766_v48 = vmul.f32 -1.442695, %v947_v44  ;;  %v424_v25 = vadd.f32 %v968_v3, %v339_v10  ;;  %v358_v26 = vpop.f32.mrf.mxu3 }
  0xb1   :  { %v815_v49 = vpop.eup %814  ;;  %v456_v50 = vadd.f32 1.0, %v813_v47  ;;  %v767_v51 = vmul.f32 -1.442695, %v950_v46  ;;  %v425_v30 = vadd.f32 %v972_v11, %v358_v26 }
  0xb2   :  { %v457_v52 = vadd.f32 1.0, %v815_v49  ;;  %816 = vpow2.f32 %v766_v48 }
  0xb3   :  { %818 = vrcp.f32 %v456_v50  ;;  %v473_v5 = vand.u32 2147483647, %v456_v50  ;;  %v475_v6 = vand.u32 2147483648, %v456_v50  ;;  %vm469_vm1 = vweird.f32 %v456_v50 }
  0xb4   :  { %820 = vrcp.f32 %v457_v52  ;;  %v488_v9 = vand.u32 2147483647, %v457_v52  ;;  %v490_v14 = vand.u32 2147483648, %v457_v52  ;;  %vm484_vm2 = vweird.f32 %v457_v52 }
  0xb5   :  { %822 = vpow2.f32 %v767_v51  ;;  %v185_v53 = vpop.f32.mrf.mxu0  ;;  %vm975_vm4 = vcmp.eq.f32.partialorder %v473_v5, 8.507059e+37  ;;  %v476_v19 = vor.u32 1.1754944e-38, %v475_v6 }
  0xb6   :  { %v955_v54 = vadd.f32 %v934_v35, %v185_v53  ;;  %v204_v55 = vpop.f32.mrf.mxu1  ;;  %vm982_vm6 = vcmp.eq.f32.partialorder %v488_v9, 8.507059e+37  ;;  %v491_v28 = vor.u32 1.1754944e-38, %v490_v14 }
  0xb7   :  { %v958_v56 = vadd.f32 %v936_v36, %v204_v55  ;;  %v341_v55 = vpop.f32.mrf.mxu2 }
  0xb8   :  { %v817_v57 = vpop.eup %816  ;;  %v768_v58 = vmul.f32 -1.442695, %v955_v54 }
  0xb9   :  { %v819_v60 = vpop.eup %818  ;;  %v964_v61 = vadd.f32 1.0, %v817_v57  ;;  %v769_v62 = vmul.f32 -1.442695, %v958_v56 }
  0xba   :  { %v821_v63 = vpop.eup %820  ;;  %v465_v0 = vmul.f32 %v819_v60, %v456_v50  ;;  %824 = vpow2.f32 %v768_v58  ;;  %vm470_vm0 = vweird.f32 %v819_v60 }
  0xbb   :  { %v823_v1 = vpop.eup %822  ;;  %v480_v2 = vmul.f32 %v821_v63, %v457_v52  ;;  %826 = vrcp.f32 %v964_v61  ;;  %vm485_vm3 = vweird.f32 %v821_v63  ;;  %vm471_vm5 = vmor %vm469_vm1, %vm470_vm0  ;;  %v503_v43 = vand.u32 2147483647, %v964_v61 }
  0xbc   :  { %v466_v4 = vsub.f32 1.0, %v465_v0  ;;  %v970_v7 = vadd.f32 1.0, %v823_v1  ;;  %828 = vpow2.f32 %v769_v62  ;;  %vm486_vm7 = vmor %vm484_vm2, %vm485_vm3  ;;  %v505_v47 = vand.u32 2147483648, %v964_v61 }
  0xbd   :  { %v481_v8 = vsub.f32 1.0, %v480_v2  ;;  %v187_v12 = vpop.f32.mrf.mxu0  ;;  %vm499_vm9 = vweird.f32 %v964_v61  ;;  %vm504_vm12 = vcmp.eq.f32.partialorder %v503_v43, 8.507059e+37  ;;  %v426_v0 = vadd.f32 %v968_v3, %v341_v55 }
  0xbe   :  { %v467_v13 = vmul.f32 %v819_v60, %v466_v4  ;;  %830 = vrcp.f32 %v970_v7  ;;  %v980_v20 = vadd.f32 %v934_v35, %v187_v12  ;;  %v206_v31 = vpop.f32.mrf.mxu1  ;;  %v520_v58 = vand.u32 2147483648, %v970_v7 }
  0xbf   :  { %v482_v15 = vmul.f32 %v821_v63, %v481_v8  ;;  %v1004_v49 = vadd.f32 %v936_v36, %v206_v31  ;;  %v506_v59 = vor.u32 1.1754944e-38, %v505_v47  ;;  %vm514_vm13 = vweird.f32 %v970_v7  ;;  %v360_v8 = vpop.f32.mrf.mxu3 }
  0xc0   :  { %v825_v16 = vpop.eup %824  ;;  %v468_v17 = vadd.f32 %v819_v60, %v467_v13  ;;  %v770_v35 = vmul.f32 -1.442695, %v980_v20  ;;  %v521_v5 = vor.u32 1.1754944e-38, %v520_v58 }
  0xc1   :  { %v827_v21 = vpop.eup %826  ;;  %v483_v22 = vadd.f32 %v821_v63, %v482_v15  ;;  %v986_v24 = vadd.f32 1.0, %v825_v16 }
  0xc2   :  { %v472_v27 = vsel %vm471_vm5, %v819_v60, %v468_v17  ;;  %v495_v29 = vmul.f32 %v827_v21, %v964_v61  ;;  %v829_v32 = vpop.eup %828  ;;  %vm500_vm8 = vweird.f32 %v827_v21  ;;  %v771_v61 = vmul.f32 -1.442695, %v1004_v49 }
  0xc3   :  { %v477_v33 = vsel %vm975_vm4, %v476_v19, %v472_v27  ;;  %v487_v34 = vsel %vm486_vm7, %v821_v63, %v483_v22  ;;  %832 = vrcp.f32 %v986_v24  ;;  %v1006_v51 = vadd.f32 1.0, %v829_v32  ;;  %vm501_vm10 = vmor %vm499_vm9, %vm500_vm8  ;;  %v344_v27 = vpop.f32.mrf.mxu2 }
  0xc4   :  { %v831_v37 = vpop.eup %830  ;;  %v584_v39 = vmul.f32 %v477_v33, %v939_v38  ;;  %v492_v41 = vsel %vm982_vm6, %v491_v28, %v487_v34  ;;  %v496_v42 = vsub.f32 1.0, %v495_v29  ;;  %834 = vpow2.f32 %v770_v35 }
  0xc5   :  { %v585_v45 = vmul.f32 %v492_v41, %v942_v40  ;;  %v510_v48 = vmul.f32 %v831_v37, %v970_v7  ;;  %v518_v40 = vand.u32 2147483647, %v970_v7  ;;  %836 = vrcp.f32 %v1006_v51 }
  0xc6   :  { %v497_v50 = vmul.f32 %v827_v21, %v496_v42  ;;  %v592_v38 = vmul.f32 %v584_v39, %v424_v25  ;;  %vm515_vm11 = vweird.f32 %v831_v37  ;;  %838 = vpow2.f32 %v771_v61 }
  0xc7   :  { %v511_v52 = vsub.f32 1.0, %v510_v48  ;;  %v593_v53 = vmul.f32 %v585_v45, %v425_v30  ;;  %vm516_vm14 = vmor %vm514_vm13, %vm515_vm11  ;;  %vm519_vm15 = vcmp.eq.f32.partialorder %v518_v40, 8.507059e+37  ;;  %v533_v12 = vand.u32 2147483647, %v986_v24  ;;  %v363_v41 = vpop.f32.mrf.mxu3 }
  0xc8   :  { %v498_v57 = vadd.f32 %v827_v21, %v497_v50  ;;  %600 = vst [vmem:[#allocation7] sm:$0xff] %v592_v38  ;;  %v535_v13 = vand.u32 2147483648, %v986_v24  ;;  %v427_v19 = vadd.f32 %v972_v11, %v360_v8  ;;  %vm529_vm1 = vweird.f32 %v986_v24 }
  0xc9   :  { %v833_v36 = vpop.eup %832  ;;  %v512_v60 = vmul.f32 %v831_v37, %v511_v52  ;;  %601 = vst [vmem:[#allocation7 + $0x8] sm:$0xff] %v593_v53  ;;  %vm534_vm3 = vcmp.eq.f32.partialorder %v533_v12, 8.507059e+37  ;;  %v428_v30 = vadd.f32 %v968_v3, %v344_v27  ;;  %vm544_vm5 = vweird.f32 %v1006_v51 }
  0xca   :  { %v502_v62 = vsel %vm501_vm10, %v827_v21, %v498_v57  ;;  %v525_v63 = vmul.f32 %v833_v36, %v986_v24  ;;  %v835_v9 = vpop.eup %834  ;;  %vm530_vm0 = vweird.f32 %v833_v36  ;;  %v536_v23 = vor.u32 1.1754944e-38, %v535_v13 }
  0xcb   :  { %v507_v1 = vsel %vm504_vm12, %v506_v59, %v502_v62  ;;  %v513_v2 = vadd.f32 %v831_v37, %v512_v60  ;;  %v837_v14 = vpop.eup %836  ;;  %v462_v17 = vadd.f32 1.0, %v835_v9  ;;  %vm531_vm2 = vmor %vm529_vm1, %vm530_vm0  ;;  %v548_v24 = vand.u32 2147483647, %v1006_v51  ;;  %v346_v59 = vpop.f32.mrf.mxu2 }
  0xcc   :  { %v586_v4 = vmul.f32 %v507_v1, %v947_v44  ;;  %v526_v6 = vsub.f32 1.0, %v525_v63  ;;  %v540_v44 = vmul.f32 %v837_v14, %v1006_v51  ;;  %v839_v22 = vpop.eup %838  ;;  %vm545_vm4 = vweird.f32 %v837_v14 }
  0xcd   :  { %v517_v10 = vsel %vm516_vm14, %v831_v37, %v513_v2  ;;  %840 = vrcp.f32 %v462_v17  ;;  %v463_v29 = vadd.f32 1.0, %v839_v22  ;;  %vm546_vm6 = vmor %vm544_vm5, %vm545_vm4  ;;  %vm549_vm7 = vcmp.eq.f32.partialorder %v548_v24, 8.507059e+37 }
  0xce   :  { %v522_v15 = vsel %vm519_vm15, %v521_v5, %v517_v10  ;;  %v527_v16 = vmul.f32 %v833_v36, %v526_v6  ;;  %v594_v7 = vmul.f32 %v586_v4, %v426_v0  ;;  %v541_v25 = vsub.f32 1.0, %v540_v44 }
  0xcf   :  { %v587_v18 = vmul.f32 %v522_v15, %v950_v46  ;;  %v550_v46 = vand.u32 2147483648, %v1006_v51  ;;  %842 = vrcp.f32 %v463_v29  ;;  %v429_v45 = vadd.f32 %v972_v11, %v363_v41  ;;  %v365_v4 = vpop.f32.mrf.mxu3 }
  0xd0   :  { %v528_v21 = vadd.f32 %v833_v36, %v527_v16  ;;  %602 = vst [vmem:[#allocation7 + $0x10] sm:$0xff] %v594_v7  ;;  %v542_v32 = vmul.f32 %v837_v14, %v541_v25  ;;  %v563_v38 = vand.u32 2147483647, %v462_v17  ;;  %v565_v52 = vand.u32 2147483648, %v462_v17 }
  0xd1   :  { %v595_v26 = vmul.f32 %v587_v18, %v427_v19  ;;  %v551_v37 = vor.u32 1.1754944e-38, %v550_v46  ;;  %vm559_vm9 = vweird.f32 %v462_v17  ;;  %vm574_vm13 = vweird.f32 %v463_v29 }
  0xd2   :  { %v532_v28 = vsel %vm531_vm2, %v833_v36, %v528_v21  ;;  %v543_v34 = vadd.f32 %v837_v14, %v542_v32  ;;  %vm564_vm11 = vcmp.eq.f32.partialorder %v563_v38, 8.507059e+37  ;;  %v566_v58 = vor.u32 1.1754944e-38, %v565_v52 }
  0xd3   :  { %v537_v31 = vsel %vm534_vm3, %v536_v23, %v532_v28  ;;  %603 = vst [vmem:[#allocation7 + $0x18] sm:$0xff] %v595_v26  ;;  %v841_v35 = vpop.eup %840  ;;  %v580_v36 = vand.u32 2147483648, %v463_v29  ;;  %v430_v1 = vadd.f32 %v968_v3, %v346_v59 }
  0xd4   :  { %v588_v33 = vmul.f32 %v537_v31, %v955_v54  ;;  %v547_v42 = vsel %vm546_vm6, %v837_v14, %v543_v34  ;;  %v555_v43 = vmul.f32 %v841_v35, %v462_v17  ;;  %vm560_vm8 = vweird.f32 %v841_v35 }
  0xd5   :  { %v552_v47 = vsel %vm549_vm7, %v551_v37, %v547_v42  ;;  %v843_v54 = vpop.eup %842  ;;  %vm561_vm10 = vmor %vm559_vm9, %vm560_vm8  ;;  %v581_v2 = vor.u32 1.1754944e-38, %v580_v36 }
  0xd6   :  { %v596_v39 = vmul.f32 %v588_v33, %v428_v30  ;;  %v589_v48 = vmul.f32 %v552_v47, %v958_v56  ;;  %v556_v50 = vsub.f32 1.0, %v555_v43  ;;  %v570_v51 = vmul.f32 %v843_v54, %v463_v29 }
  0xd7   :  { %vm575_vm12 = vweird.f32 %v843_v54  ;;  %v578_v56 = vand.u32 2147483647, %v463_v29 }
  0xd8   :  { %604 = vst [vmem:[#allocation7 + $0x20] sm:$0xff] %v596_v39  ;;  %v557_v53 = vmul.f32 %v841_v35, %v556_v50  ;;  %v597_v55 = vmul.f32 %v589_v48, %v429_v45  ;;  %v571_v40 = vsub.f32 1.0, %v570_v51  ;;  %vm576_vm14 = vmor %vm574_vm13, %vm575_vm12 }
  0xd9   :  { %vm579_vm15 = vcmp.eq.f32.partialorder %v578_v56, 8.507059e+37 }
  0xda   :  { %v558_v57 = vadd.f32 %v841_v35, %v557_v53  ;;  %605 = vst [vmem:[#allocation7 + $0x28] sm:$0xff] %v597_v55  ;;  %v572_v61 = vmul.f32 %v843_v54, %v571_v40 }
  0xdc   :  { %v562_v60 = vsel %vm561_vm10, %v841_v35, %v558_v57  ;;  %v573_v0 = vadd.f32 %v843_v54, %v572_v61 }
  0xdd   :  { %v567_v62 = vsel %vm564_vm11, %v566_v58, %v562_v60 }
  0xde   :  { %v590_v63 = vmul.f32 %v567_v62, %v980_v20  ;;  %v577_v5 = vsel %vm576_vm14, %v843_v54, %v573_v0  ;;  %v431_v20 = vadd.f32 %v972_v11, %v365_v4 }
  0xdf   :  { %v582_v8 = vsel %vm579_vm15, %v581_v2, %v577_v5 }
  0xe0   :  { %v598_v6 = vmul.f32 %v590_v63, %v430_v1  ;;  %v591_v9 = vmul.f32 %v582_v8, %v1004_v49 }
  0xe2   :  { %606 = vst [vmem:[#allocation7 + $0x30] sm:$0xff] %v598_v6  ;;  %v599_v3 = vmul.f32 %v591_v9, %v431_v20 }
  0xe4   :  { %607 = vst [vmem:[#allocation7 + $0x38] sm:$0xff] %v599_v3 }
  0xe5   :  { %620 = dma.vmem_to_hbm [thread:$0]  %s613_s25, 1024, %s615_s28, [#allocation6], %s900_s29, %s900_s29, %s901_s30  }
  0xe6   :  { %894 = dma.done.wait [#allocation6], 1024  }
  0xe7   :  { %895 = vsyncadd [#allocation6], 4294966272 }
  0xe8   :  { %625 = vsyncpa [#allocation5], 1 }
  0xe9   :  { %626 = vsyncpa [#allocation6], 1 }

</bundles_post_ra>
